<compile_context>
chip_gen: v6e
topology: v6e:2x2x1
jax: 0.10.0
libtpu: 0.0.40
codegen_flags: <defaults>
</compile_context>

<pallas_src>
import jax
import jax.numpy as jnp
from jax.experimental import pallas as pl
from jax.experimental.pallas import tpu as pltpu

C = 11                 # self.c
NOUT = C * C           # 121 critic logits
NPAD = 128             # lane-dense padded logit width
HID = 50               # hidden width of both common layers
HPAD = 64              # sublane-friendly padded hidden width
NEG_BIG = -1e30        # bias for padded logits -> softmax prob exactly 0


def _critic_kernel(x_ref, w1_ref, b1_ref, w2_ref, b2_ref, w3_ref, b3_ref,
                   out_ref):
    """One batch tile of the full forward pass.

    x_ref:  (TB, nS) f32    input tile
    w*_ref: bf16 weights (VMEM-resident), b*_ref: f32 biases
    out_ref:(TB, 128) f32   lane-dense padded softmax probabilities
    """
    # MXU operands in bf16, accumulation in f32.
    x = x_ref[...].astype(jnp.bfloat16)                        # (TB, nS)

    # Linear(nS, 64) + Tanh   (cols 50..63 are zero-weight / zero-bias)
    h = jnp.dot(x, w1_ref[...], preferred_element_type=jnp.float32)
    h = jnp.tanh(h + b1_ref[...])                              # (TB, 64) f32

    # Linear(64, 64) + Tanh
    h = jnp.dot(h.astype(jnp.bfloat16), w2_ref[...],
                preferred_element_type=jnp.float32)
    h = jnp.tanh(h + b2_ref[...])                              # (TB, 64) f32

    # Linear(64, 128)  (cols 121..127: zero weights, -1e30 bias)
    z = jnp.dot(h.astype(jnp.bfloat16), w3_ref[...],
                preferred_element_type=jnp.float32)
    z = z + b3_ref[...]                                        # (TB, 128) f32

    # Numerically stable softmax over the 128 lanes; padded lanes contribute
    # exp(-1e30 - m) == 0, so the result equals softmax over the 121 logits.
    m = jnp.max(z, axis=1, keepdims=True)                      # (TB, 1)
    e = jnp.exp(z - m)                                         # (TB, 128)
    s = jnp.sum(e, axis=1, keepdims=True)                      # (TB, 1)
    out_ref[...] = e / s          # exact divide (approx reciprocal was ~1e-3 off)


def _round8(n):
    return max(8, ((int(n) + 7) // 8) * 8)


def prepare_params(params):
    """One-time parameter prep: pad 50->64 and 121->128, cast weights to bf16.

    Numerically identical to the unpadded model: padded hidden columns are
    tanh(0)=0 and meet zero weight rows; padded logits get a -1e30 bias.
    """
    w1, b1, w2, b2, w3, b3 = params
    hp = HPAD - HID
    op = NPAD - NOUT
    w1p = jnp.pad(w1, ((0, 0), (0, hp))).astype(jnp.bfloat16)
    b1p = jnp.pad(b1, ((0, 0), (0, hp))).astype(jnp.float32)
    w2p = jnp.pad(w2, ((0, hp), (0, hp))).astype(jnp.bfloat16)
    b2p = jnp.pad(b2, ((0, 0), (0, hp))).astype(jnp.float32)
    w3p = jnp.pad(w3, ((0, hp), (0, op))).astype(jnp.bfloat16)
    b3p = jnp.pad(b3, ((0, 0), (0, op)),
                  constant_values=NEG_BIG).astype(jnp.float32)
    return (w1p, b1p, w2p, b2p, w3p, b3p)


def critic_forward(x, prepared_params, *, max_tile_b=2048):
    """x: (B, nS) float32 -> (B, c, c) float32 softmax probabilities."""
    w1, b1, w2, b2, w3, b3 = prepared_params
    B, nS = x.shape

    # --- batch tile selection -------------------------------------------
    if B <= 8:
        tb = B                                   # one tiny block
    else:
        # At least 2 grid steps so v7x's two TensorCores both get work.
        tb = min(max_tile_b, _round8(pl.cdiv(B, 2)))
        # Budget double-buffered x-in + prob-out tiles well under v7x VMEM.
        bytes_per_row = (nS + NPAD) * 4 * 2      # double-buffered, f32
        budget = 24 << 20
        tb = min(tb, max(8, (budget // bytes_per_row) // 8 * 8))
    grid = (pl.cdiv(B, tb),)

    io_bytes = 2 * tb * nS * 4 + 2 * tb * NPAD * 4
    w_bytes = sum(int(a.size) * a.dtype.itemsize
                  for a in (w1, b1, w2, b2, w3, b3))
    vmem_limit = int(min(max(2 * (io_bytes + w_bytes) + (4 << 20), 32 << 20),
                         64 << 20))

    def resident(arr):
        # Same (only) block every grid step -> stays VMEM-resident.
        return pl.BlockSpec(arr.shape, lambda i: (0, 0))

    probs = pl.pallas_call(
        _critic_kernel,
        out_shape=jax.ShapeDtypeStruct((B, NPAD), jnp.float32),
        grid=grid,
        in_specs=[
            pl.BlockSpec((tb, nS), lambda i: (i, 0)),     # x tile
            resident(w1), resident(b1),
            resident(w2), resident(b2),
            resident(w3), resident(b3),
        ],
        out_specs=pl.BlockSpec((tb, NPAD), lambda i: (i, 0)),
        compiler_params=pltpu.CompilerParams(
            dimension_semantics=("parallel",),
            vmem_limit_bytes=vmem_limit),
    )(x, w1, b1, w2, b2, w3, b3)

    # Drop padded logits, then view(-1, c, c).  If the consumer can take the
    # padded (B, 128) buffer directly, return `probs` instead to skip this
    # extra HBM pass.
    return probs[:, :NOUT].reshape(B, C, C)


def init_params(key, nS):
    """Deterministic init mimicking PyTorch nn.Linear defaults
    (uniform(-1/sqrt(fan_in), 1/sqrt(fan_in)))."""
    def linear(k, fan_in, fan_out):
        kw, kb = jax.random.split(k)
        bound = 1.0 / jnp.sqrt(jnp.float32(fan_in))
        w = jax.random.uniform(kw, (fan_in, fan_out), jnp.float32, -bound, bound)
        b = jax.random.uniform(kb, (1, fan_out), jnp.float32, -bound, bound)
        return w, b

    k1, k2, k3 = jax.random.split(key, 3)
    w1, b1 = linear(k1, nS, HID)
    w2, b2 = linear(k2, HID, HID)
    w3, b3 = linear(k3, HID, NOUT)
    return (w1, b1, w2, b2, w3, b3)


def _reference_forward(x, params):
    """Pure-JAX f32 reference (matches the PyTorch module)."""
    w1, b1, w2, b2, w3, b3 = params
    h = jnp.tanh(x @ w1 + b1)
    h = jnp.tanh(h @ w2 + b2)
    z = h @ w3 + b3
    p = jax.nn.softmax(z, axis=1)
    return p.reshape(x.shape[0], C, C)


def _reference_forward_matched(x, prepared_params):
    """Pure-JAX reference with the same bf16-operand matmuls as the kernel."""
    w1, b1, w2, b2, w3, b3 = prepared_params
    h = jnp.tanh(jnp.dot(x.astype(jnp.bfloat16), w1,
                         preferred_element_type=jnp.float32) + b1)
    h = jnp.tanh(jnp.dot(h.astype(jnp.bfloat16), w2,
                         preferred_element_type=jnp.float32) + b2)
    z = jnp.dot(h.astype(jnp.bfloat16), w3,
                preferred_element_type=jnp.float32) + b3
    p = jax.nn.softmax(z, axis=1)
    return p[:, :NOUT].reshape(x.shape[0], C, C)


if __name__ == "__main__":
    key = jax.random.PRNGKey(0)
    k_x, k_p = jax.random.split(key)

    B, nS = 16, 32                        # small synthetic shapes (2 grid steps)
    x = jax.random.normal(k_x, (B, nS), jnp.float32)
    raw_params = init_params(k_p, nS)
    params = prepare_params(raw_params)   # one-time pad + bf16 cast

    out = jax.block_until_ready(critic_forward(x, params))

    # shape + softmax normalization (exact divide -> tight row sums)
    assert out.shape == (B, C, C)
    row_sums = jnp.sum(out.reshape(B, -1), axis=1)
    assert bool(jnp.all(jnp.abs(row_sums - 1.0) < 1e-4))

    # tight match vs a reference with the same bf16 matmul operands
    ref_matched = _reference_forward_matched(x, params)
    assert bool(jnp.all(jnp.abs(out - ref_matched) < 1e-3))

    # looser match vs the full-f32 PyTorch-equivalent reference (bf16 operands)
    ref_f32 = _reference_forward(x, raw_params)
    assert bool(jnp.all(jnp.abs(out - ref_f32) < 1e-2))

    print("KERNEL_OK")
</pallas_src>

<mosaic_0001>
module attributes {stable_mosaic.version = 11 : i64} {
  func.func @_critic_kernel(%arg0: i32, %arg1: memref<8x32xf32, #tpu.memory_space<vmem>>, %arg2: memref<32x64xbf16, #tpu.memory_space<vmem>>, %arg3: memref<1x64xf32, #tpu.memory_space<vmem>>, %arg4: memref<64x64xbf16, #tpu.memory_space<vmem>>, %arg5: memref<1x64xf32, #tpu.memory_space<vmem>>, %arg6: memref<64x128xbf16, #tpu.memory_space<vmem>>, %arg7: memref<1x128xf32, #tpu.memory_space<vmem>>, %arg8: memref<8x128xf32, #tpu.memory_space<vmem>>) attributes {dimension_semantics = [#tpu.dimension_semantics<parallel>], iteration_bounds = array<i64: 2>, scalar_prefetch = 0 : i64, scratch_operands = 0 : i64, tpu.core_type = #tpu.core_type<tc>, window_params = [{transform_indices = @transform_0, window_bounds = array<i64: 8, 32>}, {pipeline_mode = #tpu.pipeline_mode<synchronous>, transform_indices = @transform_1, window_bounds = array<i64: 32, 64>}, {pipeline_mode = #tpu.pipeline_mode<synchronous>, transform_indices = @transform_2, window_bounds = array<i64: 1, 64>}, {pipeline_mode = #tpu.pipeline_mode<synchronous>, transform_indices = @transform_3, window_bounds = array<i64: 64, 64>}, {pipeline_mode = #tpu.pipeline_mode<synchronous>, transform_indices = @transform_4, window_bounds = array<i64: 1, 64>}, {pipeline_mode = #tpu.pipeline_mode<synchronous>, transform_indices = @transform_5, window_bounds = array<i64: 64, 128>}, {pipeline_mode = #tpu.pipeline_mode<synchronous>, transform_indices = @transform_6, window_bounds = array<i64: 1, 128>}, {transform_indices = @transform_7, window_bounds = array<i64: 8, 128>}]} {
    %c0 = arith.constant 0 : index
    %c0_0 = arith.constant 0 : index
    %0 = vector.load %arg1[%c0, %c0_0] : memref<8x32xf32, #tpu.memory_space<vmem>>, vector<8x32xf32>
    %1 = arith.truncf %0 : vector<8x32xf32> to vector<8x32xbf16>
    %c0_1 = arith.constant 0 : index
    %c0_2 = arith.constant 0 : index
    %2 = vector.load %arg2[%c0_1, %c0_2] : memref<32x64xbf16, #tpu.memory_space<vmem>>, vector<32x64xbf16>
    %cst = arith.constant dense<0.000000e+00> : vector<8x64xf32>
    %3 = tpu.matmul %1, %2, %cst {dimension_numbers = #tpu.dot_dimension_numbers<[1], [0], [0], [1], [0, 0, 1, 1], [], []>} : vector<8x32xbf16>, vector<32x64xbf16>, vector<8x64xf32> -> vector<8x64xf32>
    %c0_3 = arith.constant 0 : index
    %c0_4 = arith.constant 0 : index
    %4 = vector.load %arg3[%c0_3, %c0_4] : memref<1x64xf32, #tpu.memory_space<vmem>>, vector<1x64xf32>
    %5 = vector.broadcast %4 : vector<1x64xf32> to vector<8x64xf32>
    %6 = arith.addf %3, %5 : vector<8x64xf32>
    %7 = math.tanh %6 : vector<8x64xf32>
    %8 = arith.truncf %7 : vector<8x64xf32> to vector<8x64xbf16>
    %c0_5 = arith.constant 0 : index
    %c0_6 = arith.constant 0 : index
    %9 = vector.load %arg4[%c0_5, %c0_6] : memref<64x64xbf16, #tpu.memory_space<vmem>>, vector<64x64xbf16>
    %cst_7 = arith.constant dense<0.000000e+00> : vector<8x64xf32>
    %10 = tpu.matmul %8, %9, %cst_7 {dimension_numbers = #tpu.dot_dimension_numbers<[1], [0], [0], [1], [0, 0, 1, 1], [], []>} : vector<8x64xbf16>, vector<64x64xbf16>, vector<8x64xf32> -> vector<8x64xf32>
    %c0_8 = arith.constant 0 : index
    %c0_9 = arith.constant 0 : index
    %11 = vector.load %arg5[%c0_8, %c0_9] : memref<1x64xf32, #tpu.memory_space<vmem>>, vector<1x64xf32>
    %12 = vector.broadcast %11 : vector<1x64xf32> to vector<8x64xf32>
    %13 = arith.addf %10, %12 : vector<8x64xf32>
    %14 = math.tanh %13 : vector<8x64xf32>
    %15 = arith.truncf %14 : vector<8x64xf32> to vector<8x64xbf16>
    %c0_10 = arith.constant 0 : index
    %c0_11 = arith.constant 0 : index
    %16 = vector.load %arg6[%c0_10, %c0_11] : memref<64x128xbf16, #tpu.memory_space<vmem>>, vector<64x128xbf16>
    %cst_12 = arith.constant dense<0.000000e+00> : vector<8x128xf32>
    %17 = tpu.matmul %15, %16, %cst_12 {dimension_numbers = #tpu.dot_dimension_numbers<[1], [0], [0], [1], [0, 0, 1, 1], [], []>} : vector<8x64xbf16>, vector<64x128xbf16>, vector<8x128xf32> -> vector<8x128xf32>
    %c0_13 = arith.constant 0 : index
    %c0_14 = arith.constant 0 : index
    %18 = vector.load %arg7[%c0_13, %c0_14] : memref<1x128xf32, #tpu.memory_space<vmem>>, vector<1x128xf32>
    %19 = vector.broadcast %18 : vector<1x128xf32> to vector<8x128xf32>
    %20 = arith.addf %17, %19 : vector<8x128xf32>
    %cst_15 = arith.constant dense<0xFF800000> : vector<8xf32>
    %21 = vector.multi_reduction <maximumf>, %20, %cst_15 [1] : vector<8x128xf32> to vector<8xf32>
    %22 = vector.shape_cast %21 : vector<8xf32> to vector<8x1xf32>
    %23 = vector.broadcast %22 : vector<8x1xf32> to vector<8x128xf32>
    %24 = arith.subf %20, %23 : vector<8x128xf32>
    %25 = math.exp %24 : vector<8x128xf32>
    %cst_16 = arith.constant dense<0.000000e+00> : vector<8xf32>
    %26 = vector.multi_reduction <add>, %25, %cst_16 [1] : vector<8x128xf32> to vector<8xf32>
    %27 = vector.shape_cast %26 : vector<8xf32> to vector<8x1xf32>
    %28 = vector.broadcast %27 : vector<8x1xf32> to vector<8x128xf32>
    %29 = arith.divf %25, %28 : vector<8x128xf32>
    %c0_17 = arith.constant 0 : index
    %c0_18 = arith.constant 0 : index
    %30 = vector.load %arg8[%c0_17, %c0_18] : memref<8x128xf32, #tpu.memory_space<vmem>>, vector<8x128xf32>
    tpu.vector_store %arg8[%c0_17, %c0_18], %29 {strides = array<i32>} : memref<8x128xf32, #tpu.memory_space<vmem>>, vector<8x128xf32>,
    return
  }
  func.func @transform_0(%arg0: i32) -> (i32, i32) {
    %c0_i32 = arith.constant 0 : i32
    %c0_i32_0 = arith.constant 0 : i32
    return %arg0, %c0_i32 : i32, i32
  }
  func.func @transform_1(%arg0: i32) -> (i32, i32) {
    %c0_i32 = arith.constant 0 : i32
    %c0_i32_0 = arith.constant 0 : i32
    %c0_i32_1 = arith.constant 0 : i32
    return %c0_i32, %c0_i32_0 : i32, i32
  }
  func.func @transform_2(%arg0: i32) -> (i32, i32) {
    %c0_i32 = arith.constant 0 : i32
    %c0_i32_0 = arith.constant 0 : i32
    %c0_i32_1 = arith.constant 0 : i32
    return %c0_i32, %c0_i32_0 : i32, i32
  }
  func.func @transform_3(%arg0: i32) -> (i32, i32) {
    %c0_i32 = arith.constant 0 : i32
    %c0_i32_0 = arith.constant 0 : i32
    %c0_i32_1 = arith.constant 0 : i32
    return %c0_i32, %c0_i32_0 : i32, i32
  }
  func.func @transform_4(%arg0: i32) -> (i32, i32) {
    %c0_i32 = arith.constant 0 : i32
    %c0_i32_0 = arith.constant 0 : i32
    %c0_i32_1 = arith.constant 0 : i32
    return %c0_i32, %c0_i32_0 : i32, i32
  }
  func.func @transform_5(%arg0: i32) -> (i32, i32) {
    %c0_i32 = arith.constant 0 : i32
    %c0_i32_0 = arith.constant 0 : i32
    %c0_i32_1 = arith.constant 0 : i32
    return %c0_i32, %c0_i32_0 : i32, i32
  }
  func.func @transform_6(%arg0: i32) -> (i32, i32) {
    %c0_i32 = arith.constant 0 : i32
    %c0_i32_0 = arith.constant 0 : i32
    %c0_i32_1 = arith.constant 0 : i32
    return %c0_i32, %c0_i32_0 : i32, i32
  }
  func.func @transform_7(%arg0: i32) -> (i32, i32) {
    %c0_i32 = arith.constant 0 : i32
    %c0_i32_0 = arith.constant 0 : i32
    return %arg0, %c0_i32 : i32, i32
  }
}

</mosaic_0001>

<bundles_post_ra>
// kernel: tpu_custom_call.1
= control target key start
LH: loop header
LB: loop body
LE: loop exit
PB: predicated region body
PF: predicated region fallthrough
CT: control target
= control target key end

     0   :  { %s1299_s0 = inlined_call_operand.hbm [shape: f32[16,32], index: 0, kind: input, shape index: {}]   ;;  %s1300_s1 = inlined_call_operand.hbm [shape: bf16[32,64], index: 1, kind: input, shape index: {}]   ;;  %s1301_s2 = inlined_call_operand.vmem [shape: f32[1,64], index: 2, kind: input, shape index: {}]   ;;  %s1302_s3 = inlined_call_operand.hbm [shape: bf16[64,64], index: 3, kind: input, shape index: {}]   ;;  %s1303_s4 = inlined_call_operand.vmem [shape: f32[1,64], index: 4, kind: input, shape index: {}]   ;;  %s1304_s5 = inlined_call_operand.hbm [shape: bf16[64,128], index: 5, kind: input, shape index: {}]   ;;  %s1305_s6 = inlined_call_operand.vmem [shape: f32[1,128], index: 6, kind: input, shape index: {}]   ;;  %s1306_s7 = inlined_call_operand.hbm [shape: f32[16,128], index: 7, kind: output, shape index: {}]  }
   0x1   :  { %1311 = sst [smem:[#allocation15_spill]] %s1300_s1 }
   0x2   :  { %1312 = sst [smem:[#allocation16_spill]] %s1302_s3 }
   0x3   :  { %12 = vsyncpa [#allocation3], 0 }
   0x4   :  { %14 = vsyncpa [#allocation3 + $0x1], 0 }
   0x5   :  { %15 = vsyncpa [#allocation6], 0 }
   0x6   :  { %16 = vsyncpa [#allocation9], 0 }
   0x7   :  { %17 = vsyncpa [#allocation4], 0 }
   0x8   :  { %19 = vsyncpa [#allocation4 + $0x1], 0  ;;  %s1107_s24 = smov 0   ;;  %s1109_s25 = smov 0  }
   0x9   :  { %s1111_s26 = smov 0   ;;  %s1113_s27 = smov 0  }
   0xa LB: > { %s1128_s28 = sadd.s32 4294967295, %s1056_s27   ;;  %s700_s29 = sadd.s32 4294967294, %s1056_s27   ;;  %s1056_s27 = sphi %s1113_s27, %s1334_s27   ;;  %s1052_s26 = sphi %s1111_s26, %s1333_s26   ;;  %s1048_s25 = sphi %s1109_s25, %s1332_s25   ;;  %s1044_s24 = sphi %s1107_s24, %s1331_s24  }
   0xb   : > { %p45_p0 = scmp.ne.s32.totalorder %s1048_s25, %s1044_s24  ;;  %p1307_p1 = scmp.eq.s32.totalorder %s1128_s28, 0 }
   0xc   : > { %p201_p3 = scmp.eq.s32.totalorder %s700_s29, 1  ;;  %p701_p5 = scmp.ge.s32.totalorder %s1056_s27, 1 }
   0xd   : > { %p1137_p4 = por %p1307_p1, %p45_p0  ;;  %p208_p7 = scmp.lt.s32.totalorder %s1056_s27, 3 }
   0xe   : > { %p1142_p6 = por %p201_p3, %p45_p0  ;;  %s1058_s10 = smov [#allocation5]  }
   0xf   : > { %s1313_s30 = scalar_select %p1137_p4, 1, 0 }
  0x10   : > { %s1314_s8 = scalar_select %p1142_p6, 1, 0 }
  0x11   : > { %p1147_p8 = pnand %p701_p5, %p208_p7  ;;  %s220_s11 = sshll.u32 %s1058_s10, 4  ;;  %s221_s11 = int_to_ptr.vmem [resolvable:$true] %s220_s11 }
  0x12   : > { %s1059_s13 = smov [#allocation7]   ;;  %s1060_s15 = smov [#allocation8]  }
  0x13   : > { %s1315_s9 = scalar_select %p1147_p8, 1, 0 }
  0x14   : > { %p795_p9 = pneg %p1147_p8  ;;  %s236_s14 = sshll.u32 %s1059_s13, 4  ;;  %s237_s14 = int_to_ptr.vmem [resolvable:$true] %s236_s14 }
  0x15   : > { %s252_s16 = sshll.u32 %s1060_s15, 4  ;;  %s889_s17 = scalar_lea.vmem %s221_s11, 256  ;;  %s253_s16 = int_to_ptr.vmem [resolvable:$true] %s252_s16 }
  0x16   : > { %p1156_p11 = pnand %p795_p9, %p1307_p1  ;;  %p890_p13 = scmp.ne.s32.totalorder %s221_s11, %s889_s17 }
  0x17   : > { %p897_p5 = scmp.lt.s32.totalorder %s221_s11, %s221_s11  ;;  %p898_p7 = scmp.lt.s32.totalorder %s889_s17, %s889_s17 }
  0x18   : > { %p880_p12 = pneg %p1156_p11 }
  0x19   : > { %p899_p9 = por %p898_p7, %p897_p5 }
  0x1a   : > { %p892_p0 = pnand %p890_p13, %p880_p12 }
  0x1c   : > { %p893_p3 = pneg %p892_p0 }
  0x1e   : > { %p900_p10 = pnand %p899_p9, %p893_p3 }
  0x20   : > { %903 = shalt.err (!%p900_p10)
}
  0x21   : > { %s1061_s18 = smov 64   ;;  %s1062_s19 = smov 4  }
  0x22   : > { %s1317_s1 = sld [smem:[#allocation15_spill]]  ;;  %s915_s22 = scalar_lea.vmem %s237_s14, 512 }
  0x23   : > { %p916_p1 = scmp.ne.s32.totalorder %s237_s14, %s915_s22  ;;  %p923_p2 = scmp.lt.s32.totalorder %s237_s14, %s237_s14 }
  0x24   : > { %p924_p6 = scmp.lt.s32.totalorder %s915_s22, %s915_s22 }
  0x25   : > { %p918_p13 = pnand %p916_p1, %p880_p12 }
  0x26   : > { %p925_p5 = por %p924_p6, %p923_p2 }
  0x27   : > { %p919_p0 = pneg %p918_p13 }
  0x28   : > { %798 = dma.hbm_to_vmem [thread:$0]  (!%p1156_p11), %s1317_s1, 256, %s221_s11, [#allocation6], %s1061_s18, %s1061_s18, %s1062_s19  }
  0x29   : > { %p926_p3 = pnand %p925_p5, %p919_p0 }
  0x2b   : > { %929 = shalt.err (!%p926_p3)
}
  0x2c   : > { %s1318_s3 = sld [smem:[#allocation16_spill]]  ;;  %s941_s10 = scalar_lea.vmem %s253_s16, 512 }
  0x2d   : > { %p942_p10 = scmp.ne.s32.totalorder %s253_s16, %s941_s10  ;;  %p949_p9 = scmp.lt.s32.totalorder %s253_s16, %s253_s16 }
  0x2e   : > { %p950_p13 = scmp.lt.s32.totalorder %s941_s10, %s941_s10 }
  0x2f   : > { %p944_p7 = pnand %p942_p10, %p880_p12 }
  0x30   : > { %p951_p4 = por %p950_p13, %p949_p9 }
  0x31   : > { %p945_p1 = pneg %p944_p7 }
  0x32   : > { %801 = dma.hbm_to_vmem [thread:$0]  (!%p1156_p11), %s1318_s3, 512, %s237_s14, [#allocation6], %s1061_s18, %s1061_s18, %s1062_s19  }
  0x33   : > { %p952_p2 = pnand %p951_p4, %p945_p1 }
  0x35   : > { %955 = shalt.err (!%p952_p2)
}
  0x36   : > { %804 = dma.hbm_to_vmem [thread:$0]  (!%p1156_p11), %s1304_s5, 512, %s253_s16, [#allocation9], %s1061_s18, %s1061_s18, %s1062_s19  }
  0x37   : > { %s1187_s14 = sadd.s32 1, %s1056_s27   ;;  %s32_s12 = sadd.s32 1, %s1052_s26 }
  0x38   : > { %s29_s15 = ssub.s32 %s1056_s27, %s1187_s14  ;;  %p39_p6 = scmp.ne.s32.totalorder %s1052_s26, %s1048_s25 }
  0x39   : > { %p30_p4 = scmp.eq.s32.totalorder %s29_s15, 0  ;;  %p40_p12 = scmp.eq.s32.totalorder %s1056_s27, 0 }
  0x3a   : > { %p816_p0 = scmp.lt.s32.totalorder %s1056_s27, 2  ;;  %p1319_p3 = scmp.eq.s32.totalorder %s1128_s28, 1 }
  0x3b   : > { %s1197_s17 = scalar_select %p30_p4, %s1052_s26, %s32_s12  }
  0x3c   : > { %p41_p5 = por %p40_p12, %p39_p6  ;;  %p1201_p10 = por %p1319_p3, %p39_p6 }
  0x3d   : > { %s269_s21 = sand.u32 1, %s1052_s26   ;;  %s707_s22 = sshll.u32 %s1056_s27, 7 }
  0x3e   : > { %s1320_s20 = scalar_select %p1201_p10, 1, 0 }
  0x3f   : > { %s706_s16 = sshll.u32 %s269_s21, 3  ;;  %s1210_s23 = scalar_lea.hbm %s1299_s0, %s707_s22 }
  0x40   : > { %s273_s29 = scalar_lea.vmem [#allocation2], %s706_s16  ;;  %p1212_p11 = pnand %p816_p0, %p41_p5 }
  0x41   : > { %s280_s10 = sshll.u32 %s273_s29, 4  ;;  %s270_s13 = scalar_lea.sflag [#allocation3], %s269_s21  ;;  %s281_s10 = int_to_ptr.vmem [resolvable:$true] %s280_s10 }
  0x42   : > { %s956_s15 = scalar_lea.hbm %s1210_s23, 128  ;;  %p958_p1 = pneg %p1212_p11 }
  0x43   : > { %p957_p7 = scmp.ne.s32.totalorder %s1210_s23, %s956_s15  ;;  %s961_s18 = scalar_lea.hbm %s1299_s0, 256 }
  0x44   : > { %p962_p2 = scmp.lt.s32.totalorder %s1210_s23, %s1299_s0  ;;  %p963_p4 = scmp.lt.s32.totalorder %s961_s18, %s956_s15 }
  0x45   : > { %p959_p9 = pnand %p958_p1, %p957_p7 }
  0x46   : > { %p964_p6 = por %p963_p4, %p962_p2 }
  0x47   : > { %p960_p13 = pneg %p959_p9 }
  0x49   : > { %p965_p12 = pnand %p964_p6, %p960_p13 }
  0x4b   : > { %968 = shalt.err (!%p965_p12)
}
  0x4c   : > { %s969_s29 = scalar_lea.vmem %s281_s10, 128  ;;  %s1063_s21 = smov [#allocation2]  }
  0x4d   : > { %p970_p0 = scmp.ne.s32.totalorder %s281_s10, %s969_s29  ;;  %s974_s1 = sshll.u32 %s1063_s21, 4  ;;  %s975_s1 = int_to_ptr.vmem [resolvable:$false] %s974_s1 }
  0x4e   : > { %s976_s3 = scalar_lea.vmem %s975_s1, 256  ;;  %p977_p7 = scmp.lt.s32.totalorder %s281_s10, %s975_s1 }
  0x4f   : > { %p972_p5 = pnand %p970_p0, %p958_p1  ;;  %p978_p9 = scmp.lt.s32.totalorder %s976_s3, %s969_s29 }
  0x51   : > { %p973_p3 = pneg %p972_p5  ;;  %p979_p10 = por %p978_p9, %p977_p7 }
  0x53   : > { %p980_p8 = pnand %p979_p10, %p973_p3 }
  0x55   : > { %983 = shalt.err (!%p980_p8)
}
  0x56   : > { %808 = dma.hbm_to_vmem [thread:$0]  (!%p1212_p11), %s1210_s23, 128, %s281_s10, %s270_s13  }
  0x57   : > { %p1322_p13 = scmp.ne.s32.totalorder %s1315_s9, 0 }
  0x58   : > { %s1233_s15 = sand.u32 (!%p1322_p13), 1, %s1048_s25   ;;  %p1323_p10 = scmp.ne.s32.totalorder (!%p1322_p13), %s1313_s30, 0 }
  0x59   : > { %289 = sbr.rel (%p1322_p13) target bundleno = 1051 (0x41b), region = 48  ;;  %s709_s12 = sshll.u32 (!%p1322_p13), %s1233_s15, 3 }
  0x5a   : > { %s292_s1 = scalar_lea.sflag (!%p1322_p13), [#allocation3], %s1233_s15  ;;  %s295_s3 = scalar_lea.vmem (!%p1322_p13), [#allocation2], %s709_s12 }
  0x5e   : > { %1027 = dma.done.wait (%p1323_p10), %s292_s1, 128  }
  0x5f   : > { %1029 = vsyncadd (%p1323_p10), %s292_s1, 4294967168  ;;  %p1324_p8 = scmp.eq.s32.totalorder %s1128_s28, 0 }
  0x61   : > { %1031 = dma.done.wait (%p1324_p8), [#allocation6], 768   ;;  %p1325_p11 = pmov %p1324_p8 }
  0x62   : > { %p1326_p1 = pmov %p1324_p8 }
  0x63   : > { %1033 = vsyncadd (%p1325_p11), [#allocation6], 4294966528 }
  0x64   : > { %1035 = dma.done.wait (%p1326_p1), [#allocation9], 512   ;;  %p1327_p2 = pmov %p1326_p1 }
  0x65   : > { %v1064_v0 = vmov 0.0   ;;  %vm1065_vm0 = vmmov 0   ;;  %v860_v1 = vld [vmem:[#allocation5 + $0x8] sm:$0xff]   ;;  %v861_v2 = vld [vmem:[#allocation5] sm:$0xff]   ;;  %v339_v3 = vld [vmem:[%s295_s3] sm:$0xff]  ;;  %vm364_vm1 = vcmask 261120  }
  0x66   : > { %1037 = vsyncadd (%p1327_p2), [#allocation9], 4294966784  ;;  %747 = vmatprep.subr.bf16.mxu0 %v1064_v0  ;;  %751 = vmatprep.mubr.msk.bf16.mxu0 %vm1065_vm0, %v1064_v0  ;;  %v340_v4 = vpack.c.bf16 %v339_v3, %v339_v3  ;;  %v862_v5 = vld [vmem:[#allocation7 + $0x18] sm:$0xff]   ;;  %v863_v6 = vld [vmem:[#allocation7 + $0x10] sm:$0xff]   ;;  %vm449_vm2 = vcmask 523264   ;;  %s731_s22 = sshll.u32 %s1128_s28, 7 }
  0x67   : > { %755 = vmatprep.subr.bf16.mxu1 %v1064_v0  ;;  %763 = vmatprep.mubr.msk.bf16.mxu1 %vm1065_vm0, %v1064_v0  ;;  %v864_v7 = vld [vmem:[#allocation7 + $0x8] sm:$0xff]   ;;  %v865_v8 = vld [vmem:[#allocation7] sm:$0xff]   ;;  %v866_v17 = vld [vmem:[#allocation8 + $0x18] sm:$0xff]   ;;  %s337_s18 = scalar_lea.vmem [#allocation10], %s709_s12  ;;  %s599_s21 = scalar_lea.hbm %s1306_s7, %s731_s22 }
  0x68   : > { %748 = vmatpush3.bf16.msra.mxu0 %v860_v1  ;;  %756 = vmatpush3.bf16.msra.mxu1 %v862_v5  ;;  %v714_v9 = vld [vmem:[%s1301_s2] ss:$0 sm:$0xff]  ;;  %v867_v18 = vld [vmem:[#allocation8 + $0x10] sm:$0xff]   ;;  %v868_v19 = vld [vmem:[#allocation8 + $0x8] sm:$0xff]   ;;  %s601_s19 = sshll.u32 %s337_s18, 4  ;;  %s588_s1 = scalar_lea.sflag [#allocation4], %s1233_s15  ;;  %s602_s19 = int_to_ptr.vmem [resolvable:$true] %s601_s19 }
  0x69   : > { %749 = vmatprep.subr.bf16.mxu0 %v1064_v0  ;;  %757 = vmatprep.subr.bf16.mxu1 %v1064_v0  ;;  %v869_v20 = vld [vmem:[#allocation8] sm:$0xff]   ;;  %s984_s3 = scalar_lea.vmem %s602_s19, 128  ;;  %p1328_p6 = scmp.ne.s32.totalorder %s1320_s20, 0 }
  0x6a   : > { %v718_v21 = vld [vmem:[%s1303_s4] ss:$0 sm:$0xff]  ;;  %p985_p4 = scmp.ne.s32.totalorder %s602_s19, %s984_s3  ;;  %s1066_s30 = smov [#allocation10]  }
  0x6b   : > { %v724_v29 = vld [vmem:[%s1305_s6] ss:$0 sm:$0xff]  ;;  %s988_s9 = sshll.u32 %s1066_s30, 4  ;;  %s989_s9 = int_to_ptr.vmem [resolvable:$false] %s988_s9 }
  0x6c   : > { %750 = vmatpush3.bf16.msra.mxu0 %v861_v2  ;;  %758 = vmatpush3.bf16.msra.mxu1 %v863_v6  ;;  %p986_p12 = pnand %p985_p4, %p1328_p6  ;;  %s990_s28 = scalar_lea.vmem %s989_s9, 256 }
  0x6d   : > { %767 = vmatprep.subr.bf16.mxu0 %v1064_v0  ;;  %759 = vmatprep.subr.bf16.mxu1 %v1064_v0  ;;  %p991_p5 = scmp.lt.s32.totalorder %s602_s19, %s989_s9  ;;  %p992_p3 = scmp.lt.s32.totalorder %s990_s28, %s984_s3 }
  0x6e   : > { %p987_p0 = pneg %p986_p12 }
  0x6f   : > { %752 = vmatmul.mubr.msk.bf16.vlgmr.msra.gmra.mxu0 %vm364_vm1, %v340_v4  ;;  %p993_p7 = por %p992_p3, %p991_p5 }
  0x70   : > { %775 = vmatprep.mubr.msk.bf16.mxu0 %vm1065_vm0, %v1064_v0  ;;  %760 = vmatpush3.bf16.msra.mxu1 %v864_v7 }
  0x71   : > { %761 = vmatprep.subr.bf16.mxu1 %v1064_v0  ;;  %768 = vmatpush3.bf16.msra.mxu0 %v866_v17  ;;  %p994_p9 = pnand %p993_p7, %p987_p0 }
  0x72   : > { %769 = vmatprep.subr.bf16.mxu0 %v1064_v0 }
  0x74   : > { %762 = vmatpush3.bf16.msra.mxu1 %v865_v8 }
  0x75   : > { %770 = vmatpush3.bf16.msra.mxu0 %v867_v18 }
  0x76   : > { %771 = vmatprep.subr.bf16.mxu0 %v1064_v0 }
  0x79   : > { %772 = vmatpush3.bf16.msra.mxu0 %v868_v19 }
  0x7a   : > { %773 = vmatprep.subr.bf16.mxu0 %v1064_v0 }
  0x7d   : > { %774 = vmatpush3.bf16.msra.mxu0 %v869_v20 }
 0x12f   : > { %v402_v10 = vpop.f32.mrf.mxu0 }
 0x130   : > { %v403_v11 = vadd.f32 %v714_v9, %v402_v10 }
 0x131   : > { %v753_v12 = vpop.f32.mrf.mxu0 }
 0x132   : > { %870 = vtanh.f32 %v403_v11 }
 0x133   : > { %v405_v13 = vpop.f32.mrf.mxu0 }
 0x135   : > { %v754_v14 = vpop.f32.mrf.mxu0 }
 0x13f   : > { %v871_v15 = vpop.eup %870 }
 0x140   : > { %v409_v16 = vpack.c.bf16 %v871_v15, %v871_v15 }
 0x142   : > { %764 = vmatmul.mubr.msk.bf16.vlgmr.msra.gmra.mxu1 %vm449_vm2, %v409_v16 }
 0x202   : > { %v487_v22 = vpop.f32.mrf.mxu1 }
 0x203   : > { %v488_v23 = vadd.f32 %v718_v21, %v487_v22 }
 0x204   : > { %v765_v24 = vpop.f32.mrf.mxu1 }
 0x205   : > { %872 = vtanh.f32 %v488_v23 }
 0x206   : > { %v490_v25 = vpop.f32.mrf.mxu1 }
 0x208   : > { %v766_v26 = vpop.f32.mrf.mxu1 }
 0x212   : > { %v873_v27 = vpop.eup %872 }
 0x213   : > { %v494_v28 = vpack.c.bf16 %v873_v27, %v873_v27 }
 0x215   : > { %776 = vmatmul.mubr.msk.bf16.vlgmr.msra.gmra.mxu0 %vm449_vm2, %v494_v28 }
 0x2d5   : > { %v571_v30 = vpop.f32.mrf.mxu0 }
 0x2d6   : > { %v572_v31 = vadd.f32 %v724_v29, %v571_v30 }
 0x2d7   : > { %v777_v32 = vpop.f32.mrf.mxu0 }
 0x2d8   : > { %577 = vmax.xlane.f32.xlu0 %v572_v31 }
 0x2d9   : > { %v574_v33 = vpop.f32.mrf.mxu0 }
 0x2db   : > { %v778_v34 = vpop.f32.mrf.mxu0 }
 0x361   : > { %v578_v35 = vpop.xlane.xlu0 %577 }
 0x362   : > { %v579_v36 = vsub.f32 %v572_v31, %v578_v35 }
 0x364   : > { %v580_v37 = vmul.f32 1.442695, %v579_v36 }
 0x366   : > { %874 = vpow2.f32 %v580_v37 }
 0x373   : > { %v875_v38 = vpop.eup %874 }
 0x374   : > { %582 = vadd.xlane.f32.xlu0 %v875_v38 }
 0x3fd   : > { %v583_v39 = vpop.xlane.xlu0 %582 }
 0x3fe   : > { %876 = vrcp.f32 %v583_v39 }
 0x40b   : > { %v877_v40 = vpop.eup %876 }
 0x40c   : > { %v585_v41 = vmul.f32 %v877_v40, %v875_v38 }
 0x40e   : > { %586 = vst [vmem:[%s337_s18] sm:$0xff] %v585_v41 }
 0x40f   : > { %997 = shalt.err (!%p994_p9)
}
 0x410   : > { %s998_s12 = scalar_lea.hbm %s599_s21, 128  ;;  %s1002_s10 = scalar_lea.hbm %s1306_s7, 256 }
 0x411   : > { %p999_p13 = scmp.ne.s32.totalorder %s599_s21, %s998_s12  ;;  %p1003_p11 = scmp.lt.s32.totalorder %s599_s21, %s1306_s7 }
 0x412   : > { %p1004_p1 = scmp.lt.s32.totalorder %s1002_s10, %s998_s12 }
 0x413   : > { %p1000_p10 = pnand %p999_p13, %p1328_p6 }
 0x414   : > { %p1005_p2 = por %p1004_p1, %p1003_p11 }
 0x415   : > { %p1001_p8 = pneg %p1000_p10 }
 0x417   : > { %p1006_p4 = pnand %p1005_p2, %p1001_p8 }
 0x419   : > { %1009 = shalt.err (!%p1006_p4)
}
 0x41a   : > { %793 = dma.vmem_to_hbm [thread:$0]  (%p1328_p6), %s602_s19, 128, %s599_s21, %s588_s1  }
 0x41b PF: > { %s613_s22 = sand.u32 1, %s1044_s24   ;;  %p1329_p12 = scmp.ne.s32.totalorder %s1314_s8, 0 }
 0x41c   : > { %p1330_p0 = scmp.ge.s32.totalorder %s1056_s27, 2  ;;  %s614_s18 = scalar_lea.sflag [#allocation4], %s613_s22 }
 0x41e   : > { %p810_p5 = pnand %p1330_p0, %p1329_p12 }
 0x420   : > { %p811_p3 = pneg %p810_p5 }
 0x422   : > { %1039 = dma.done.wait (%p811_p3), %s614_s18, 128  }
 0x423   : > { %1041 = vsyncadd (%p811_p3), %s614_s18, 4294967168  ;;  %p22_p7 = scmp.ge.s32.totalorder %s1187_s14, 4   ;;  %s1331_s24 = smov %s1048_s25 }
 0x424   : > { %s1332_s25 = smov %s1052_s26  ;;  %s1333_s26 = smov %s1197_s17 }
 0x425   : > { %s1334_s27 = smov %s1187_s14  ;;  %24 = sbr.rel (!%p22_p7) target bundleno = 10 (0xa), region = 105 }
 0x42a   :  { %619 = vsyncpa [#allocation3], 1 }
 0x42b   :  { %621 = vsyncpa [#allocation3 + $0x1], 1 }
 0x42c   :  { %622 = vsyncpa [#allocation6], 1 }
 0x42d   :  { %623 = vsyncpa [#allocation9], 1 }
 0x42e   :  { %624 = vsyncpa [#allocation4], 1 }
 0x42f   :  { %626 = vsyncpa [#allocation4 + $0x1], 1 }

</bundles_post_ra>
